<compile_context>
chip_gen: v7x
topology: tpu7x:2x2x1
jax: 0.10.0
libtpu: 0.0.40
codegen_flags: <defaults>
</compile_context>

<pallas_src>
import math

import jax
import jax.numpy as jnp
from jax.experimental import pallas as pl
from jax.experimental.pallas import tpu as pltpu

# ---- module config constants -------------------------------------------------
SYN_SIZE = 3
HIDDEN_SIZE = 32          # input_size == hidden_size == HIDDEN_SIZE
R = 4                     # only used by the rank-optimized (non-BASELINE) path
Bias = True
SIM_BIAS = True
BASELINE = True
RESIDUAL_DROPOUT = 0.1    # dropout layer is constructed but never applied in forward


# ---- Pallas kernel -----------------------------------------------------------
def gcn_kernel(graph_ref, nodes_ref, w_ref, bias_ref, out_ref):
    """GCN layer over a block of Bb batch elements.

    graph_ref : (Bb, L, N, N)      bfloat16  (per-label adjacency, transposed layout)
    nodes_ref : (Bb, N, Hin)       bfloat16
    w_ref     : (L*Hin, Hout)      bfloat16  (W pre-reshaped, shared across grid)
    bias_ref  : (1, Hout)          float32   (sim_bias, shared across grid)
    out_ref   : (Bb, N, Hout)      float32
    """
    Bb, L, n, _ = graph_ref.shape
    hin = nodes_ref.shape[2]
    hout = w_ref.shape[1]

    g = graph_ref[...]                                     # (Bb, L, N, N) bf16
    nodes = nodes_ref[...]                                 # (Bb, N, Hin)  bf16

    # Stage 1: per-label neighbourhood aggregation x_l = G_l @ nodes, concatenated
    # along the lane axis to (Bb, N, L*Hin) so stage 2 is a single wide matmul.
    xs = [
        jnp.einsum('bij,bjk->bik', g[:, l], nodes,
                   preferred_element_type=jnp.float32)     # (Bb, N, Hin) f32
        for l in range(L)
    ]
    x_cat = jnp.concatenate(xs, axis=-1).astype(jnp.bfloat16)   # (Bb, N, L*Hin)

    # Stage 2: one fused matmul over the whole batch block (MXU, f32 accumulate).
    h = jnp.dot(x_cat.reshape(Bb * n, L * hin), w_ref[...],
                preferred_element_type=jnp.float32)        # (Bb*N, Hout) f32
    h = h.reshape(Bb, n, hout) + bias_ref[...]             # + sim_bias (broadcast)

    # Degree normalisation: norm[b,i] = sum_{l,j} graph[b,i,j,l] + 1e-10
    deg = jnp.sum(g.astype(jnp.float32), axis=(1, 3)) + 1e-10      # (Bb, N)
    inv = pl.reciprocal(deg, approx=True)[:, :, None]              # (Bb, N, 1)

    out_ref[...] = jnp.maximum(h * inv, 0.0).astype(out_ref.dtype)


# ---- wrapper -----------------------------------------------------------------
def gcn_forward(graph, nodes, W, sim_bias, *, block_b=128):
    """graph (B, n, n, L), nodes (B, n, Hin) -> (B, n, Hout)."""
    B, n, _, L = graph.shape
    Hin = nodes.shape[2]
    Hout = W.shape[2]

    # Layout + precision prep (fused by XLA into single passes over the inputs).
    # NOTE: upstream producers should emit graph directly as (B, L, n, n) to avoid
    # this HBM transpose once n grows; at toy sizes it is noise.
    graph_t = jnp.transpose(graph, (0, 3, 1, 2)).astype(jnp.bfloat16)   # (B, L, n, n)
    nodes_b = nodes.astype(jnp.bfloat16)                                # (B, n, Hin)
    w_flat = W.reshape(L * Hin, Hout).astype(jnp.bfloat16)              # (L*Hin, Hout)
    bias2 = sim_bias.reshape(1, Hout).astype(jnp.float32)               # (1, Hout)

    # Batch-block the grid so each step processes Bb elements (amortize step cost).
    Bb = min(block_b, B)
    B_pad = pl.cdiv(B, Bb) * Bb
    if B_pad != B:
        pad = B_pad - B
        graph_t = jnp.pad(graph_t, ((0, pad), (0, 0), (0, 0), (0, 0)))
        nodes_b = jnp.pad(nodes_b, ((0, pad), (0, 0), (0, 0)))

    grid_spec = pltpu.PrefetchScalarGridSpec(
        num_scalar_prefetch=0,
        grid=(B_pad // Bb,),
        in_specs=[
            pl.BlockSpec((Bb, L, n, n), lambda b: (b, 0, 0, 0)),
            pl.BlockSpec((Bb, n, Hin), lambda b: (b, 0, 0)),
            pl.BlockSpec((L * Hin, Hout), lambda b: (0, 0)),
            pl.BlockSpec((1, Hout), lambda b: (0, 0)),
        ],
        out_specs=pl.BlockSpec((Bb, n, Hout), lambda b: (b, 0, 0)),
    )

    out = pl.pallas_call(
        gcn_kernel,
        out_shape=jax.ShapeDtypeStruct((B_pad, n, Hout), jnp.float32),
        grid_spec=grid_spec,
        compiler_params=pltpu.CompilerParams(
            dimension_semantics=("parallel",)),   # lets v7x shard batch over 2 TCs
    )(graph_t, nodes_b, w_flat, bias2)

    return out[:B]


# ---- pure-JAX f32 reference (mirrors the PyTorch basic_gcn_h + forward) ------
def gcn_reference(graph, nodes, W, sim_bias):
    B, n, _, L = graph.shape
    H = nodes.shape[2]
    hp = jax.lax.Precision.HIGHEST
    g = jnp.transpose(graph.astype(jnp.float32), (0, 1, 3, 2)).reshape(B, n * L, n)
    x = jnp.matmul(g, nodes.astype(jnp.float32), precision=hp).reshape(B, n, L * H)
    h = jnp.matmul(x, W.reshape(L * H, -1), precision=hp) + sim_bias
    norm = graph.reshape(B, n, n * L).sum(-1)[..., None] + 1e-10
    return jax.nn.relu(h / norm)


# ---- deterministic xavier-normal-style init ----------------------------------
def xavier_normal(key, shape, fan_in, fan_out):
    std = math.sqrt(2.0 / (fan_in + fan_out))
    return std * jax.random.normal(key, shape, dtype=jnp.float32)


if __name__ == "__main__":
    B, n, L, H = 4, 8, SYN_SIZE, HIDDEN_SIZE

    key = jax.random.PRNGKey(0)
    k_g, k_x, k_w, k_b = jax.random.split(key, 4)

    # graph: (B, n, n, L) 0/1 adjacency-like; nodes: (B, n, H)
    graph = (jax.random.uniform(k_g, (B, n, n, L)) < 0.5).astype(jnp.float32)
    nodes = jax.random.normal(k_x, (B, n, H), dtype=jnp.float32)

    # parameters (shapes from __init__; input_size == hidden_size == HIDDEN_SIZE)
    W = xavier_normal(k_w, (L, H, H), fan_in=H, fan_out=H)            # (SYN_SIZE, in, hid)
    sim_bias = xavier_normal(k_b, (1, 1, H), fan_in=1, fan_out=H)     # (1, 1, hid)
    # TODO(synk): label_rank/label_Q/label_P/label_b (rank-optimized non-BASELINE path)
    # and the per-label bias self.b (SIM_BIAS=False branch) are not exercised here.

    out = gcn_forward(graph, nodes, W, sim_bias)
    out = jax.block_until_ready(out)

    ref = gcn_reference(graph, nodes, W, sim_bias)
    assert out.shape == (B, n, H) and out.dtype == jnp.float32
    # Kernel feeds the MXU bf16 inputs (f32 accumulation); tolerance sized for
    # bf16 input rounding vs. the full-f32 reference (typical error ~1e-3).
    assert jnp.allclose(out, ref, atol=2e-2, rtol=2e-2), (
        "mismatch vs reference, max abs diff = %f" % float(jnp.max(jnp.abs(out - ref))))

    print("KERNEL_OK")
</pallas_src>

<mosaic_0001>
module attributes {stable_mosaic.version = 11 : i64} {
  func.func @gcn_kernel(%arg0: i32, %arg1: memref<4x3x8x8xbf16, #tpu.memory_space<vmem>>, %arg2: memref<4x8x32xbf16, #tpu.memory_space<vmem>>, %arg3: memref<96x32xbf16, #tpu.memory_space<vmem>>, %arg4: memref<1x32xf32, #tpu.memory_space<vmem>>, %arg5: memref<4x8x32xf32, #tpu.memory_space<vmem>>) attributes {dimension_semantics = [#tpu.dimension_semantics<parallel>], iteration_bounds = array<i64: 1>, scalar_prefetch = 0 : i64, scratch_operands = 0 : i64, tpu.core_type = #tpu.core_type<tc>, window_params = [{transform_indices = @transform_0, window_bounds = array<i64: 4, 3, 8, 8>}, {transform_indices = @transform_1, window_bounds = array<i64: 4, 8, 32>}, {pipeline_mode = #tpu.pipeline_mode<synchronous>, transform_indices = @transform_2, window_bounds = array<i64: 96, 32>}, {pipeline_mode = #tpu.pipeline_mode<synchronous>, transform_indices = @transform_3, window_bounds = array<i64: 1, 32>}, {transform_indices = @transform_4, window_bounds = array<i64: 4, 8, 32>}]} {
    %c0 = arith.constant 0 : index
    %c0_0 = arith.constant 0 : index
    %c0_1 = arith.constant 0 : index
    %c0_2 = arith.constant 0 : index
    %0 = vector.load %arg1[%c0, %c0_0, %c0_1, %c0_2] : memref<4x3x8x8xbf16, #tpu.memory_space<vmem>>, vector<4x3x8x8xbf16>
    %c0_3 = arith.constant 0 : index
    %c0_4 = arith.constant 0 : index
    %c0_5 = arith.constant 0 : index
    %1 = vector.load %arg2[%c0_3, %c0_4, %c0_5] : memref<4x8x32xbf16, #tpu.memory_space<vmem>>, vector<4x8x32xbf16>
    %2 = vector.extract_strided_slice %0 {offsets = [0, 0, 0, 0], sizes = [4, 1, 8, 8], strides = [1, 1, 1, 1]} : vector<4x3x8x8xbf16> to vector<4x1x8x8xbf16>
    %3 = vector.shape_cast %2 : vector<4x1x8x8xbf16> to vector<4x8x8xbf16>
    "tpu.trace_start"() <{level = 10 : i32, message = "bij,bjk->bik"}> : () -> ()
    %cst = arith.constant dense<0.000000e+00> : vector<4x8x32xf32>
    %4 = tpu.matmul %3, %1, %cst {dimension_numbers = #tpu.dot_dimension_numbers<[2], [1], [1], [2], [0, 0, 0, 1, 1, 2], [0], [0]>} : vector<4x8x8xbf16>, vector<4x8x32xbf16>, vector<4x8x32xf32> -> vector<4x8x32xf32>
    "tpu.trace_stop"() : () -> ()
    %5 = vector.extract_strided_slice %0 {offsets = [0, 1, 0, 0], sizes = [4, 1, 8, 8], strides = [1, 1, 1, 1]} : vector<4x3x8x8xbf16> to vector<4x1x8x8xbf16>
    %6 = vector.shape_cast %5 : vector<4x1x8x8xbf16> to vector<4x8x8xbf16>
    "tpu.trace_start"() <{level = 10 : i32, message = "bij,bjk->bik"}> : () -> ()
    %cst_6 = arith.constant dense<0.000000e+00> : vector<4x8x32xf32>
    %7 = tpu.matmul %6, %1, %cst_6 {dimension_numbers = #tpu.dot_dimension_numbers<[2], [1], [1], [2], [0, 0, 0, 1, 1, 2], [0], [0]>} : vector<4x8x8xbf16>, vector<4x8x32xbf16>, vector<4x8x32xf32> -> vector<4x8x32xf32>
    "tpu.trace_stop"() : () -> ()
    %8 = vector.extract_strided_slice %0 {offsets = [0, 2, 0, 0], sizes = [4, 1, 8, 8], strides = [1, 1, 1, 1]} : vector<4x3x8x8xbf16> to vector<4x1x8x8xbf16>
    %9 = vector.shape_cast %8 : vector<4x1x8x8xbf16> to vector<4x8x8xbf16>
    "tpu.trace_start"() <{level = 10 : i32, message = "bij,bjk->bik"}> : () -> ()
    %cst_7 = arith.constant dense<0.000000e+00> : vector<4x8x32xf32>
    %10 = tpu.matmul %9, %1, %cst_7 {dimension_numbers = #tpu.dot_dimension_numbers<[2], [1], [1], [2], [0, 0, 0, 1, 1, 2], [0], [0]>} : vector<4x8x8xbf16>, vector<4x8x32xbf16>, vector<4x8x32xf32> -> vector<4x8x32xf32>
    "tpu.trace_stop"() : () -> ()
    %11 = tpu.concatenate %4, %7, %10 in 2 : vector<4x8x32xf32>, vector<4x8x32xf32>, vector<4x8x32xf32> -> vector<4x8x96xf32>
    %12 = arith.truncf %11 : vector<4x8x96xf32> to vector<4x8x96xbf16>
    %13 = vector.shape_cast %12 : vector<4x8x96xbf16> to vector<32x96xbf16>
    %c0_8 = arith.constant 0 : index
    %c0_9 = arith.constant 0 : index
    %14 = vector.load %arg3[%c0_8, %c0_9] : memref<96x32xbf16, #tpu.memory_space<vmem>>, vector<96x32xbf16>
    %cst_10 = arith.constant dense<0.000000e+00> : vector<32x32xf32>
    %15 = tpu.matmul %13, %14, %cst_10 {dimension_numbers = #tpu.dot_dimension_numbers<[1], [0], [0], [1], [0, 0, 1, 1], [], []>} : vector<32x96xbf16>, vector<96x32xbf16>, vector<32x32xf32> -> vector<32x32xf32>
    %16 = vector.shape_cast %15 : vector<32x32xf32> to vector<4x8x32xf32>
    %c0_11 = arith.constant 0 : index
    %c0_12 = arith.constant 0 : index
    %17 = vector.load %arg4[%c0_11, %c0_12] : memref<1x32xf32, #tpu.memory_space<vmem>>, vector<1x32xf32>
    %18 = vector.shape_cast %17 : vector<1x32xf32> to vector<1x1x32xf32>
    %19 = vector.broadcast %18 : vector<1x1x32xf32> to vector<4x8x32xf32>
    %20 = arith.addf %16, %19 : vector<4x8x32xf32>
    %21 = arith.extf %0 : vector<4x3x8x8xbf16> to vector<4x3x8x8xf32>
    %cst_13 = arith.constant dense<0.000000e+00> : vector<4x8xf32>
    %22 = vector.multi_reduction <add>, %21, %cst_13 [1, 3] : vector<4x3x8x8xf32> to vector<4x8xf32>
    %cst_14 = arith.constant 1.000000e-10 : f32
    %23 = vector.broadcast %cst_14 : f32 to vector<4x8xf32>
    %24 = arith.addf %22, %23 : vector<4x8xf32>
    %25 = tpu.reciprocal %24 {approx = true} : vector<4x8xf32> -> vector<4x8xf32>
    %26 = vector.shape_cast %25 : vector<4x8xf32> to vector<4x8x1xf32>
    %27 = vector.broadcast %26 : vector<4x8x1xf32> to vector<4x8x32xf32>
    %28 = arith.mulf %20, %27 : vector<4x8x32xf32>
    %cst_15 = arith.constant 0.000000e+00 : f32
    %29 = vector.broadcast %cst_15 : f32 to vector<4x8x32xf32>
    %30 = arith.maximumf %28, %29 : vector<4x8x32xf32>
    %c0_16 = arith.constant 0 : index
    %c0_17 = arith.constant 0 : index
    %c0_18 = arith.constant 0 : index
    %31 = vector.load %arg5[%c0_16, %c0_17, %c0_18] : memref<4x8x32xf32, #tpu.memory_space<vmem>>, vector<4x8x32xf32>
    tpu.vector_store %arg5[%c0_16, %c0_17, %c0_18], %30 {strides = array<i32>} : memref<4x8x32xf32, #tpu.memory_space<vmem>>, vector<4x8x32xf32>,
    return
  }
  func.func @transform_0(%arg0: i32) -> (i32, i32, i32, i32) {
    %c0_i32 = arith.constant 0 : i32
    %c0_i32_0 = arith.constant 0 : i32
    %c0_i32_1 = arith.constant 0 : i32
    %c0_i32_2 = arith.constant 0 : i32
    return %arg0, %c0_i32, %c0_i32_0, %c0_i32_1 : i32, i32, i32, i32
  }
  func.func @transform_1(%arg0: i32) -> (i32, i32, i32) {
    %c0_i32 = arith.constant 0 : i32
    %c0_i32_0 = arith.constant 0 : i32
    %c0_i32_1 = arith.constant 0 : i32
    return %arg0, %c0_i32, %c0_i32_0 : i32, i32, i32
  }
  func.func @transform_2(%arg0: i32) -> (i32, i32) {
    %c0_i32 = arith.constant 0 : i32
    %c0_i32_0 = arith.constant 0 : i32
    %c0_i32_1 = arith.constant 0 : i32
    return %c0_i32, %c0_i32_0 : i32, i32
  }
  func.func @transform_3(%arg0: i32) -> (i32, i32) {
    %c0_i32 = arith.constant 0 : i32
    %c0_i32_0 = arith.constant 0 : i32
    %c0_i32_1 = arith.constant 0 : i32
    return %c0_i32, %c0_i32_0 : i32, i32
  }
  func.func @transform_4(%arg0: i32) -> (i32, i32, i32) {
    %c0_i32 = arith.constant 0 : i32
    %c0_i32_0 = arith.constant 0 : i32
    %c0_i32_1 = arith.constant 0 : i32
    return %arg0, %c0_i32, %c0_i32_0 : i32, i32, i32
  }
}

</mosaic_0001>

<bundles_post_ra>
// kernel: tpu_custom_call.1
= control target key start
LH: loop header
LB: loop body
LE: loop exit
PB: predicated region body
PF: predicated region fallthrough
CT: control target
= control target key end

     0   :  { %vm39_vm0 = vcmask 1043456   ;;  %v1022_v1 = vmov 0.0   ;;  %vm1023_vm1 = vmmov 0   ;;  %vm35_vm2 = vcmask 64512   ;;  %s1271_s0 = inlined_call_operand.vmem [shape: bf16[4,3,8,8], index: 0, kind: input, shape index: {}]   ;;  %s1272_s1 = inlined_call_operand.vmem [shape: bf16[4,8,32], index: 1, kind: input, shape index: {}]   ;;  %s1273_s2 = inlined_call_operand.vmem [shape: bf16[96,32], index: 2, kind: input, shape index: {}]   ;;  %s1274_s3 = inlined_call_operand.vmem [shape: f32[1,32], index: 3, kind: input, shape index: {}]   ;;  %s1275_s4 = inlined_call_operand.hbm [shape: f32[4,8,32], index: 4, kind: output, shape index: {}]  }
   0x1   :  { %v31_v0 = vld [vmem:[%s1272_s1] sm:$0xf]  ;;  %869 = vmatprep.subr.bf16.mxu1 %v1022_v1  ;;  %871 = vmatprep.mubr.msk.bf16.mxu1 %vm1023_vm1, %v1022_v1  ;;  %v32_v3 = vld [vmem:[%s1272_s1 + $0x4] sm:$0xf]  ;;  %v33_v6 = vld [vmem:[%s1272_s1 + $0x8] sm:$0xf] }
   0x2   :  { %v41_v2 = vsel %vm39_vm0, %v31_v0, 0  ;;  %v1067_v4 = vld [vmem:[%s1271_s0] sm:$0xf]  ;;  %881 = vmatprep.subr.bf16.mxu0 %v1022_v1  ;;  %v87_v5 = vsel %vm39_vm0, %v32_v3, 0  ;;  %883 = vmatprep.mubr.msk.bf16.mxu0 %vm1023_vm1, %v1022_v1  ;;  %v133_v7 = vsel %vm39_vm0, %v33_v6, 0 }
   0x3   :  { %870 = vmatpush3.bf16.msra.mxu1 %v41_v2  ;;  %882 = vmatpush3.bf16.msra.mxu0 %v133_v7  ;;  %v1083_v8 = vld [vmem:[%s1271_s0 + $0x18] sm:$0xf]  ;;  %v34_v9 = vld [vmem:[%s1272_s1 + $0xc] sm:$0xf] }
   0x4   :  { %875 = vmatprep.subr.bf16.mxu1 %v1022_v1  ;;  %893 = vmatprep.subr.bf16.mxu0 %v1022_v1  ;;  %v1095_v10 = vld [vmem:[%s1271_s0 + $0xc] sm:$0xf]  ;;  %v179_v11 = vsel %vm39_vm0, %v34_v9, 0 }
   0x6   :  { %872 = vmatmul.mubr.msk.bf16.vlgmr.msra.gmra.mrb[0].mxu1 %vm35_vm2, %v1067_v4  ;;  %884 = vmatmul.mubr.msk.bf16.vlgmr.msra.gmra.mrb[0].mxu0 %vm35_vm2, %v1083_v8 }
   0x7   :  { %876 = vmatpush3.bf16.msra.mxu1 %v87_v5  ;;  %877 = vmatprep.mubr.msk.bf16.mxu1 %vm1023_vm1, %v1022_v1 }
   0x8   :  { %887 = vmatprep.subr.bf16.mxu1 %v1022_v1  ;;  %894 = vmatpush3.bf16.msra.mxu0 %v41_v2 }
   0x9   :  { %895 = vmatprep.mubr.msk.bf16.mxu0 %vm1023_vm1, %v1022_v1  ;;  %905 = vmatprep.subr.bf16.mxu0 %v1022_v1 }
   0xa   :  { %9 = vsyncpa [#allocation3], 0  ;;  %v1108_v12 = vld [vmem:[%s1271_s0 + $0x4] sm:$0xf]  ;;  %v1128_v14 = vld [vmem:[%s1271_s0 + $0x1c] sm:$0xf] }
   0xb   :  { %v1120_v13 = vld [vmem:[%s1271_s0 + $0x24] sm:$0xf]  ;;  %v1140_v15 = vld [vmem:[%s1271_s0 + $0x10] sm:$0xf]  ;;  %v1148_v16 = vld [vmem:[%s1271_s0 + $0x8] sm:$0xf] }
   0xc   :  { %v1160_v17 = vld [vmem:[%s1271_s0 + $0x28] sm:$0xf]  ;;  %v1167_v18 = vld [vmem:[%s1271_s0 + $0x20] sm:$0xf]  ;;  %v1177_v19 = vld [vmem:[%s1271_s0 + $0x14] sm:$0xf] }
   0xd   :  { %v1186_v20 = vld [vmem:[%s1271_s0 + $0x2c] sm:$0xf]  ;;  %v984_v38 = vld [vmem:[%s1273_s2] sm:$0xff]   ;;  %v986_v48 = vld [vmem:[%s1273_s2 + $0x10] sm:$0xff]   ;;  %s1024_s25 = smov 32   ;;  %s1025_s5 = smov 64  }
   0xe   :  { %878 = vmatmul.mubr.msk.bf16.vlgmr.msra.gmra.mrb[4].mxu1 %vm35_vm2, %v1095_v10  ;;  %896 = vmatmul.mubr.msk.bf16.vlgmr.msra.gmra.mrb[4].mxu0 %vm35_vm2, %v1108_v12  ;;  %v985_v45 = vld [vmem:[%s1273_s2 + $0x8] sm:$0xff]   ;;  %v987_v56 = vld [vmem:[%s1273_s2 + $0x18] sm:$0xff]   ;;  %v988_v61 = vld [vmem:[%s1273_s2 + $0x20] sm:$0xff]   ;;  %vm597_vm3 = vcmask 261120   ;;  %vm602_vm4 = vcmask 523264   ;;  %vm669_vm5 = vcmask 785408  }
   0xf   :  { %888 = vmatpush3.bf16.msra.mxu1 %v179_v11  ;;  %889 = vmatprep.mubr.msk.bf16.mxu1 %vm1023_vm1, %v1022_v1  ;;  %v989_v3 = vld [vmem:[%s1273_s2 + $0x28] sm:$0xff]   ;;  %s1026_s7 = smov [#allocation2]  }
  0x10   :  { %899 = vmatprep.subr.bf16.mxu1 %v1022_v1  ;;  %906 = vmatpush3.bf16.msra.mxu0 %v133_v7  ;;  %s801_s8 = sshll.u32 %s1026_s7, 4  ;;  %s802_s8 = int_to_ptr.vmem [resolvable:$true] %s801_s8 }
  0x11   :  { %907 = vmatprep.mubr.msk.bf16.mxu0 %vm1023_vm1, %v1022_v1  ;;  %917 = vmatprep.subr.bf16.mxu0 %v1022_v1  ;;  %p1003_p1 = scmp.lt.s32.totalorder %s802_s8, %s802_s8 }
  0x16   :  { %890 = vmatmul.mubr.msk.bf16.vlgmr.msra.gmra.mrb[8].mxu1 %vm35_vm2, %v1120_v13  ;;  %908 = vmatmul.mubr.msk.bf16.vlgmr.msra.gmra.mrb[8].mxu0 %vm35_vm2, %v1128_v14 }
  0x17   :  { %900 = vmatpush3.bf16.msra.mxu1 %v87_v5  ;;  %901 = vmatprep.mubr.msk.bf16.mxu1 %vm1023_vm1, %v1022_v1 }
  0x18   :  { %911 = vmatprep.subr.bf16.mxu1 %v1022_v1  ;;  %918 = vmatpush3.bf16.msra.mxu0 %v41_v2 }
  0x19   :  { %919 = vmatprep.mubr.msk.bf16.mxu0 %vm1023_vm1, %v1022_v1  ;;  %929 = vmatprep.subr.bf16.mxu0 %v1022_v1 }
  0x1e   :  { %902 = vmatmul.mubr.msk.bf16.vlgmr.msra.gmra.mrb[12].mxu1 %vm35_vm2, %v1140_v15  ;;  %920 = vmatmul.mubr.msk.bf16.vlgmr.msra.gmra.mrb[12].mxu0 %vm35_vm2, %v1148_v16 }
  0x1f   :  { %912 = vmatpush3.bf16.msra.mxu1 %v179_v11  ;;  %913 = vmatprep.mubr.msk.bf16.mxu1 %vm1023_vm1, %v1022_v1 }
  0x20   :  { %923 = vmatprep.subr.bf16.mxu1 %v1022_v1  ;;  %930 = vmatpush3.bf16.msra.mxu0 %v133_v7 }
  0x21   :  { %931 = vmatprep.mubr.msk.bf16.mxu0 %vm1023_vm1, %v1022_v1  ;;  %941 = vmatprep.subr.bf16.mxu0 %v984_v38 }
  0x26   :  { %914 = vmatmul.mubr.msk.bf16.vlgmr.msra.gmra.mrb[16].mxu1 %vm35_vm2, %v1160_v17  ;;  %932 = vmatmul.mubr.msk.bf16.vlgmr.msra.gmra.mrb[16].mxu0 %vm35_vm2, %v1167_v18 }
  0x27   :  { %924 = vmatpush3.bf16.msra.mxu1 %v87_v5  ;;  %925 = vmatprep.mubr.msk.bf16.mxu1 %vm1023_vm1, %v1022_v1 }
  0x28   :  { %935 = vmatprep.subr.bf16.mxu1 %v1022_v1  ;;  %942 = vmatpush3.bf16.msra.mxu0 %v984_v38 }
  0x29   :  { %943 = vmatprep.subr.bf16.mxu0 %v985_v45 }
  0x2c   :  { %944 = vmatpush3.bf16.msra.mxu0 %v985_v45 }
  0x2d   :  { %945 = vmatprep.subr.bf16.mxu0 %v986_v48 }
  0x2e   :  { %926 = vmatmul.mubr.msk.bf16.vlgmr.msra.gmra.mrb[20].mxu1 %vm35_vm2, %v1177_v19 }
  0x2f   :  { %936 = vmatpush3.bf16.msra.mxu1 %v179_v11  ;;  %937 = vmatprep.mubr.msk.bf16.mxu1 %vm1023_vm1, %v1022_v1 }
  0x30   :  { %946 = vmatpush3.bf16.msra.mxu0 %v986_v48 }
  0x31   :  { %947 = vmatprep.subr.bf16.mxu0 %v987_v56 }
  0x34   :  { %948 = vmatpush3.bf16.msra.mxu0 %v987_v56 }
  0x35   :  { %949 = vmatprep.subr.bf16.mxu0 %v988_v61 }
  0x36   :  { %938 = vmatmul.mubr.msk.bf16.vlgmr.msra.gmra.mrb[24].mxu1 %vm35_vm2, %v1186_v20 }
  0x38   :  { %950 = vmatpush3.bf16.msra.mxu0 %v988_v61 }
  0x39   :  { %951 = vmatprep.subr.bf16.mxu0 %v989_v3 }
  0x3c   :  { %952 = vmatpush3.bf16.msra.mxu0 %v989_v3 }
  0xd9   :  { %v1190_v21 = vpop.f32.mrb[0].mxu1  ;;  %v1192_v25 = vpop.f32.mrb[0].mxu0 }
  0xda   :  { %v873_v22 = vpop.f32.mrb[1].mxu1  ;;  %v885_v26 = vpop.f32.mrb[1].mxu0 }
  0xdb   :  { %v80_v23 = vpop.f32.mrb[2].mxu1  ;;  %v172_v27 = vpop.f32.mrb[2].mxu0 }
  0xdc   :  { %v874_v24 = vpop.f32.mrb[3].mxu1  ;;  %v886_v28 = vpop.f32.mrb[3].mxu0 }
  0xdd   :  { %v736_v28 = vunpack.c.l.bf16 %v1067_v4 }
  0xe1   :  { %v1194_v29 = vpop.f32.mrb[4].mxu1  ;;  %v258_v33 = vpop.f32.mrb[4].mxu0 }
  0xe2   :  { %v879_v30 = vpop.f32.mrb[5].mxu1  ;;  %v897_v34 = vpop.f32.mrb[5].mxu0 }
  0xe3   :  { %v126_v31 = vpop.f32.mrb[6].mxu1  ;;  %v261_v35 = vpop.f32.mrb[6].mxu0  ;;  %v748_v34 = vsel %vm35_vm2, %v736_v28, 0.0 }
  0xe4   :  { %v880_v32 = vpop.f32.mrb[7].mxu1  ;;  %v898_v36 = vpop.f32.mrb[7].mxu0  ;;  %v737_v31 = vunpack.c.l.bf16 %v1108_v12  ;;  %v745_v12 = vunpack.c.l.bf16 %v1120_v13  ;;  %v739_v13 = vunpack.c.l.bf16 %v1095_v10 }
  0xe5   :  { %v742_v32 = vunpack.c.l.bf16 %v1083_v8  ;;  %v743_v36 = vunpack.c.l.bf16 %v1128_v14  ;;  %v746_v8 = vunpack.c.l.bf16 %v1160_v17  ;;  %v740_v17 = vunpack.c.l.bf16 %v1140_v15 }
  0xe6   :  { %v749_v35 = vsel %vm35_vm2, %v737_v31, 0.0  ;;  %v769_v14 = vsel %vm35_vm2, %v745_v12, 0.0 }
  0xe7   :  { %v750_v38 = vadd.f32 %v749_v35, %v748_v34 }
  0xe9   :  { %v1196_v37 = vpop.f32.mrb[8].mxu1  ;;  %v344_v42 = vpop.f32.mrb[8].mxu0 }
  0xea   :  { %v891_v39 = vpop.f32.mrb[9].mxu1  ;;  %v909_v43 = vpop.f32.mrb[9].mxu0 }
  0xeb   :  { %v218_v40 = vpop.f32.mrb[10].mxu1  ;;  %v347_v44 = vpop.f32.mrb[10].mxu0  ;;  %v744_v39 = vunpack.c.l.bf16 %v1167_v18  ;;  %v770_v18 = vsel %vm35_vm2, %v746_v8, 0.0 }
  0xec   :  { %v892_v41 = vpop.f32.mrb[11].mxu1  ;;  %v910_v46 = vpop.f32.mrb[11].mxu0  ;;  %v762_v40 = vsel %vm35_vm2, %v742_v32, 0.0  ;;  %v747_v44 = vunpack.c.l.bf16 %v1186_v20  ;;  %v755_v20 = vsel %vm35_vm2, %v739_v13, 0.0 }
  0xed   :  { %v763_v41 = vsel %vm35_vm2, %v743_v36, 0.0  ;;  %v765_v43 = vsel %vm35_vm2, %v744_v39, 0.0  ;;  %v771_v46 = vadd.f32 %v770_v18, %v769_v14 }
  0xf1   :  { %v301_v47 = vpop.f32.mrb[12].mxu1  ;;  %v430_v53 = vpop.f32.mrb[12].mxu0 }
  0xf2   :  { %v964_v49 = vpack.i.bf16 %v301_v47, %v258_v33  ;;  %v903_v50 = vpop.f32.mrb[13].mxu1  ;;  %v921_v54 = vpop.f32.mrb[13].mxu0  ;;  %v738_v33 = vunpack.c.l.bf16 %v1148_v16  ;;  %v772_v47 = vsel %vm35_vm2, %v747_v44, 0.0 }
  0xf3   :  { %v304_v51 = vpop.f32.mrb[14].mxu1  ;;  %v433_v55 = vpop.f32.mrb[14].mxu0  ;;  %v773_v48 = vadd.f32 %v772_v47, %v771_v46  ;;  %v756_v50 = vsel %vm35_vm2, %v740_v17, 0.0 }
  0xf4   :  { %965 = vrot.lane.b32.xlu0 %v964_v49, %s1024_s25  ;;  %v904_v52 = vpop.f32.mrb[15].mxu1  ;;  %v922_v57 = vpop.f32.mrb[15].mxu0  ;;  %v751_v4 = vsel %vm35_vm2, %v738_v33, 0.0  ;;  %v741_v49 = vunpack.c.l.bf16 %v1177_v19  ;;  %v757_v51 = vadd.f32 %v756_v50, %v755_v20 }
  0xf5   :  { %v752_v16 = vadd.f32 %v751_v4, %v750_v38 }
  0xf6   :  { %v758_v52 = vsel %vm35_vm2, %v741_v49, 0.0 }
  0xf9   :  { %v387_v58 = vpop.f32.mrb[16].mxu1  ;;  %v516_v0 = vpop.f32.mrb[16].mxu0 }
  0xfa   :  { %v969_v59 = vpack.i.bf16 %v387_v58, %v344_v42  ;;  %v915_v60 = vpop.f32.mrb[17].mxu1  ;;  %v933_v1 = vpop.f32.mrb[17].mxu0  ;;  %v764_v42 = vadd.f32 %v763_v41, %v762_v40 }
  0xfb   :  { %v390_v62 = vpop.f32.mrb[18].mxu1  ;;  %v519_v2 = vpop.f32.mrb[18].mxu0 }
  0xfc   :  { %970 = vrot.lane.b32.xlu0 %v969_v59, %s1024_s25  ;;  %v916_v63 = vpop.f32.mrb[19].mxu1  ;;  %v934_v5 = vpop.f32.mrb[19].mxu0  ;;  %v766_v45 = vadd.f32 %v765_v43, %v764_v42 }
 0x101   :  { %v473_v6 = vpop.f32.mrb[20].mxu1 }
 0x102   :  { %v974_v7 = vpack.i.bf16 %v473_v6, %v430_v53  ;;  %v927_v9 = vpop.f32.mrb[21].mxu1  ;;  %v759_v53 = vadd.f32 %v758_v52, %v757_v51 }
 0x103   :  { %v476_v11 = vpop.f32.mrb[22].mxu1 }
 0x104   :  { %975 = vrot.lane.b32.xlu1 %v974_v7, %s1025_s5  ;;  %v928_v22 = vpop.f32.mrb[23].mxu1 }
 0x109   :  { %v559_v23 = vpop.f32.mrb[24].mxu1 }
 0x10a   :  { %v979_v24 = vpack.i.bf16 %v559_v23, %v516_v0  ;;  %v939_v26 = vpop.f32.mrb[25].mxu1 }
 0x10b   :  { %v562_v27 = vpop.f32.mrb[26].mxu1 }
 0x10c   :  { %980 = vrot.lane.b32.xlu1 %v979_v24, %s1025_s5  ;;  %v940_v30 = vpop.f32.mrb[27].mxu1 }
 0x11b   :  { %753 = vadd.xlane.f32.xlu0 %v752_v16 }
 0x11f   :  { %767 = vadd.xlane.f32.xlu0 %v766_v45 }
 0x123   :  { %774 = vadd.xlane.f32.xlu0 %v773_v48 }
 0x130   :  { %760 = vadd.xlane.f32.xlu1 %v759_v53 }
 0x166   :  { %v966_v54 = vpop.permute.xlu0 %965 }
 0x167   :  { %v968_v55 = vunpack.i.h.bf16 %v966_v54  ;;  %v967_v56 = vunpack.i.l.bf16 %v966_v54 }
 0x169   :  { %v599_v19 = vsel %vm597_vm3, %v1194_v29, %v968_v55  ;;  %v598_v58 = vsel %vm597_vm3, %v1190_v21, %v967_v56 }
 0x16e   :  { %v971_v59 = vpop.permute.xlu0 %970 }
 0x16f   :  { %v973_v63 = vunpack.i.h.bf16 %v971_v59  ;;  %v972_v0 = vunpack.i.l.bf16 %v971_v59 }
 0x171   :  { %v601_v5 = vsel %vm597_vm3, %v1196_v37, %v973_v63  ;;  %v600_v29 = vsel %vm597_vm3, %v1192_v25, %v972_v0  ;;  %v834_v25 = vld [vmem:[%s1274_s3] ss:$0 sm:$0xff]  ;;  %s998_s3 = scalar_lea.vmem %s802_s8, 512 }
 0x172   :  { %p999_p0 = scmp.ne.s32.totalorder %s802_s8, %s998_s3  ;;  %p1004_p2 = scmp.lt.s32.totalorder %s998_s3, %s998_s3 }
 0x174   :  { %p1005_p3 = por %p1004_p2, %p1003_p1 }
 0x176   :  { %v976_v10 = vpop.permute.xlu1 %975  ;;  %p1006_p4 = pnand %p1005_p3, %p999_p0 }
 0x177   :  { %v978_v57 = vunpack.i.h.bf16 %v976_v10  ;;  %v977_v15 = vunpack.i.l.bf16 %v976_v10 }
 0x179   :  { %v604_v60 = vsel %vm602_vm4, %v599_v19, %v978_v57  ;;  %v603_v61 = vsel %vm602_vm4, %v598_v58, %v977_v15 }
 0x17a   :  { %v835_v62 = vpack.c.bf16 %v604_v60, %v603_v61 }
 0x17c   :  { %953 = vmatprep.mubr.msk.bf16.mxu0 %vm669_vm5, %v835_v62 }
 0x17e   :  { %v981_v1 = vpop.permute.xlu1 %980 }
 0x17f   :  { %v983_v2 = vunpack.i.h.bf16 %v981_v1  ;;  %v982_v3 = vunpack.i.l.bf16 %v981_v1 }
 0x181   :  { %v606_v21 = vsel %vm602_vm4, %v601_v5, %v983_v2  ;;  %v605_v6 = vsel %vm602_vm4, %v600_v29, %v982_v3 }
 0x182   :  { %v836_v7 = vpack.c.bf16 %v606_v21, %v605_v6 }
 0x184   :  { %954 = vmatmul.mubr.msk.bf16.vlgmr.msra.gmra.mrb[20].mxu0 %vm669_vm5, %v836_v7 }
 0x1a8   :  { %v754_v9 = vpop.xlane.xlu0 %753 }
 0x1a9   :  { %v776_v26 = vadd.f32 1e-10, %v754_v9 }
 0x1ac   :  { %v768_v11 = vpop.xlane.xlu0 %767 }
 0x1ad   :  { %v778_v23 = vadd.f32 1e-10, %v768_v11 }
 0x1af   :  { %990 = vrcp.f32 %v778_v23 }
 0x1b0   :  { %v775_v22 = vpop.xlane.xlu0 %774  ;;  %992 = vrcp.f32 %v776_v26 }
 0x1b1   :  { %v779_v27 = vadd.f32 1e-10, %v775_v22 }
 0x1b3   :  { %994 = vrcp.f32 %v779_v27 }
 0x1b9   :  { %v991_v37 = vpop.eup %990 }
 0x1ba   :  { %v993_v31 = vpop.eup %992 }
 0x1bd   :  { %v761_v24 = vpop.xlane.xlu1 %760  ;;  %v995_v34 = vpop.eup %994 }
 0x1be   :  { %v777_v28 = vadd.f32 1e-10, %v761_v24 }
 0x1c0   :  { %996 = vrcp.f32 %v777_v28 }
 0x1ca   :  { %v997_v38 = vpop.eup %996 }
 0x257   :  { %v955_v30 = vpop.f32.mrb[20].mxu0 }
 0x258   :  { %v734_v32 = vadd.f32 %v955_v30, %v834_v25  ;;  %v710_v33 = vpop.f32.mrb[21].mxu0 }
 0x259   :  { %v732_v35 = vadd.f32 %v834_v25, %v710_v33  ;;  %v956_v36 = vpop.f32.mrb[22].mxu0 }
 0x25a   :  { %v786_v39 = vmul.f32 %v991_v37, %v734_v32  ;;  %v735_v40 = vadd.f32 %v956_v36, %v834_v25  ;;  %v713_v4 = vpop.f32.mrb[23].mxu0 }
 0x25b   :  { %v784_v41 = vmul.f32 %v993_v31, %v732_v35  ;;  %v733_v12 = vadd.f32 %v834_v25, %v713_v4 }
 0x25c   :  { %v790_v8 = vmax.f32 %v786_v39, 0.0  ;;  %v787_v16 = vmul.f32 %v995_v34, %v735_v40 }
 0x25d   :  { %v788_v42 = vmax.f32 %v784_v41, 0.0  ;;  %v785_v43 = vmul.f32 %v997_v38, %v733_v12 }
 0x25e   :  { %794 = vst.msk [vmem:[#allocation2 + $0x10] sm:$0xff] %vm597_vm3, %v790_v8  ;;  %v791_v44 = vmax.f32 %v787_v16, 0.0 }
 0x25f   :  { %792 = vst.msk [vmem:[#allocation2] sm:$0xff] %vm597_vm3, %v788_v42  ;;  %v789_v14 = vmax.f32 %v785_v43, 0.0 }
 0x260   :  { %795 = vst.msk [vmem:[#allocation2 + $0x18] sm:$0xff] %vm597_vm3, %v791_v44 }
 0x261   :  { %793 = vst.msk [vmem:[#allocation2 + $0x8] sm:$0xff] %vm597_vm3, %v789_v14 }
 0x262   :  { %1009 = shalt.err (!%p1006_p4)
}
 0x263   :  { %s1010_s11 = scalar_lea.hbm %s1275_s4, 512 }
 0x264   :  { %p1011_p5 = scmp.ne.s32.totalorder %s1275_s4, %s1010_s11  ;;  %p1014_p6 = scmp.lt.u32.totalorder %s1010_s11, %s1275_s4 }
 0x266   :  { %p1016_p7 = pnand %p1014_p6, %p1011_p5 }
 0x268   :  { %1019 = shalt.err (!%p1016_p7)
}
 0x269   :  { %s1027_s16 = smov 128   ;;  %s1028_s17 = smov 8  }
 0x26a   :  { %807 = dma.vmem_to_hbm [thread:$0]  %s802_s8, 512, %s1275_s4, [#allocation3], %s1027_s16, %s1027_s16, %s1028_s17  }
 0x26b   :  { %1020 = dma.done.wait [#allocation3], 512  }
 0x26c   :  { %1021 = vsyncadd [#allocation3], 4294966784 }
 0x26d   :  { %811 = vsyncpa [#allocation3], 1 }

</bundles_post_ra>
